<compile_context>
chip_gen: v7x
topology: tpu7x:2x2x1
jax: 0.10.0
libtpu: 0.0.40
codegen_flags: <defaults>
</compile_context>

<pallas_src>
import functools

import jax
import jax.numpy as jnp
import numpy as np
from jax.experimental import pallas as pl
from jax.experimental.pallas import tpu as pltpu

ITERATIONS = 8
CHANNELS = 3


# --------------------------------------------------------------------------
# Runtime probe: does pltpu.roll follow np.roll semantics
# (out[p] = in[(p - shift) % N]) or the opposite?  Determined once on the
# real backend and baked in as a static kernel parameter so the 3x3 tap
# shifts are always correct.
# --------------------------------------------------------------------------
def _detect_roll_np_like():
    def kernel(x_ref, o_ref):
        o_ref[...] = pltpu.roll(x_ref[...], 1, 1)

    x = jnp.tile(jnp.arange(256, dtype=jnp.float32)[None, :], (8, 1))
    out = pl.pallas_call(
        kernel, out_shape=jax.ShapeDtypeStruct((8, 256), jnp.float32))(x)
    v = float(out[0, 0])
    if v == 255.0:
        return True          # matches np.roll
    if v == 1.0:
        return False         # opposite convention
    raise RuntimeError(f"unexpected pltpu.roll behaviour (probe value {v})")


# --------------------------------------------------------------------------
# Per-tap validity masks for zero padding, built on the host once.
# masks[t, 0, p] == 1.0 iff pixel p has an in-bounds neighbour at (dy, dx),
# with t = (dy + 1) * 3 + (dx + 1).
# --------------------------------------------------------------------------
def _tap_masks(H, W):
    HW = H * W
    yy, xx = np.meshgrid(np.arange(H), np.arange(W), indexing="ij")
    yy = yy.reshape(-1)
    xx = xx.reshape(-1)
    masks = np.zeros((9, 1, HW), np.float32)
    t = 0
    for dy in (-1, 0, 1):
        for dx in (-1, 0, 1):
            valid = ((yy + dy >= 0) & (yy + dy < H) &
                     (xx + dx >= 0) & (xx + dx < W))
            masks[t, 0] = valid.astype(np.float32)
            t += 1
    return jnp.asarray(masks)


# --------------------------------------------------------------------------
# Fused ZeroDCE kernel: one grid step == one image.
# Activations live as (C, H*W) f32 values; H*W is the (dense) lane axis.
# --------------------------------------------------------------------------
def _zero_dce_kernel(x_ref, masks_ref,
                     w1, b1, w2, b2, w3, b3, w4, b4,
                     w5a, w5b, b5, w6a, w6b, b6, w7, b7,
                     xe_ref, xr_ref,
                     *, H, W, C, iterations, roll_np_like):
    HW = H * W

    def shifted(x, dy, dx):
        """x is (Cin, H*W); returns x sampled at (y+dy, x+dx), zero-padded."""
        s = dy * W + dx
        if s == 0:
            return x
        amount = ((-s) % HW) if roll_np_like else (s % HW)
        xs = pltpu.roll(x, amount, 1)               # XLU lane rotation
        t = (dy + 1) * 3 + (dx + 1)
        return xs * masks_ref[t]                    # (1, HW) broadcasts over Cin

    def conv3x3(inputs, b_ref, act):
        """inputs: list of (x (Cin_i, HW) f32, w_ref (3, 3, Cout, Cin_i))."""
        cout = inputs[0][1].shape[2]
        acc = jnp.zeros((cout, HW), jnp.float32)
        for dy in (-1, 0, 1):
            for dx in (-1, 0, 1):
                for x, w_ref in inputs:
                    acc = acc + jnp.dot(w_ref[dy + 1, dx + 1],
                                        shifted(x, dy, dx),
                                        preferred_element_type=jnp.float32)
        acc = acc + b_ref[...]                      # (Cout, 1) broadcasts over HW
        if act == "relu":
            acc = jnp.maximum(acc, 0.0)
        elif act == "tanh":
            acc = jnp.tanh(acc)
        return acc

    x0 = x_ref[...].astype(jnp.float32)
    x1 = conv3x3([(x0, w1)], b1, "relu")
    x2 = conv3x3([(x1, w2)], b2, "relu")
    x3 = conv3x3([(x2, w3)], b3, "relu")
    x4 = conv3x3([(x3, w4)], b4, "relu")
    # conv(cat([x3, x4])) == conv(x3, w5[:, :32]) + conv(x4, w5[:, 32:])
    x5 = conv3x3([(x3, w5a), (x4, w5b)], b5, "relu")
    # conv(cat([x2, x5])) == conv(x2, w6[:, :32]) + conv(x5, w6[:, 32:])
    x6 = conv3x3([(x2, w6a), (x5, w6b)], b6, "relu")
    x_r = conv3x3([(x6, w7)], b7, "tanh")

    # Enhancement curve fused in the same kernel (x_r never re-read from HBM).
    xe = x0
    for i in range(iterations):
        ri = x_r[i * C:(i + 1) * C, :]
        xe = xe + ri * (xe * xe - xe)
        xe = jnp.clip(xe, 0.0, 1.0)

    xe_ref[...] = xe.astype(xe_ref.dtype)
    xr_ref[...] = x_r.astype(xr_ref.dtype)


def _const_spec(arr):
    """Full-array block, fetched once (constant block index across the grid)."""
    zeros = (0,) * arr.ndim

    def index_map(n):
        return zeros

    return pl.BlockSpec(arr.shape, index_map)


def zero_dce_forward(x_nchw, params, *, channels=CHANNELS,
                     iterations=ITERATIONS, roll_np_like=True):
    """params: list of 7 (weight (Cout, Cin, 3, 3), bias (Cout,)) PyTorch-layout pairs."""
    N, C, H, W = x_nchw.shape
    HW = H * W
    CR = channels * iterations

    x = x_nchw.reshape(N, C, HW).astype(jnp.float32)   # NCHW -> (N, C, H*W), no transpose
    masks = _tap_masks(H, W)

    def cvt(w):                                        # OIHW -> (kh, kw, Cout, Cin)
        return jnp.transpose(w, (2, 3, 0, 1))

    def rb(b):
        return b.reshape(-1, 1)

    (w1, b1), (w2, b2), (w3, b3), (w4, b4), (w5, b5), (w6, b6), (w7, b7) = params
    h5 = w5.shape[1] // 2
    h6 = w6.shape[1] // 2
    w5a, w5b = w5[:, :h5], w5[:, h5:]                  # halves for x3 / x4
    w6a, w6b = w6[:, :h6], w6[:, h6:]                  # halves for x2 / x5

    flat_params = [cvt(w1), rb(b1), cvt(w2), rb(b2), cvt(w3), rb(b3),
                   cvt(w4), rb(b4), cvt(w5a), cvt(w5b), rb(b5),
                   cvt(w6a), cvt(w6b), rb(b6), cvt(w7), rb(b7)]

    kernel = functools.partial(_zero_dce_kernel, H=H, W=W, C=C,
                               iterations=iterations,
                               roll_np_like=roll_np_like)

    in_specs = ([pl.BlockSpec((None, C, HW), lambda n: (n, 0, 0)),
                 _const_spec(masks)]
                + [_const_spec(p) for p in flat_params])

    xe, xr = pl.pallas_call(
        kernel,
        out_shape=(jax.ShapeDtypeStruct((N, C, HW), jnp.float32),
                   jax.ShapeDtypeStruct((N, CR, HW), jnp.float32)),
        grid_spec=pltpu.PrefetchScalarGridSpec(
            num_scalar_prefetch=0,
            grid=(N,),
            in_specs=in_specs,
            out_specs=(pl.BlockSpec((None, C, HW), lambda n: (n, 0, 0)),
                       pl.BlockSpec((None, CR, HW), lambda n: (n, 0, 0))),
        ),
        compiler_params=pltpu.CompilerParams(
            dimension_semantics=("parallel",)),
    )(x, masks, *flat_params)

    x_enhanced = xe.reshape(N, C, H, W)
    x_r = xr.reshape(N, CR, H, W)
    r = tuple(x_r[:, i * channels:(i + 1) * channels]
              for i in range(iterations))
    return x_enhanced, r


# --------------------------------------------------------------------------
# Deterministic synthetic parameters (PyTorch Conv2d layout: OIHW + bias).
# --------------------------------------------------------------------------
def init_params(key, channels=CHANNELS, iterations=ITERATIONS):
    shapes = [(32, channels), (32, 32), (32, 32), (32, 32),
              (32, 64), (32, 64), (channels * iterations, 32)]
    params = []
    for cout, cin in shapes:
        key, kw, kb = jax.random.split(key, 3)
        scale = 1.0 / jnp.sqrt(jnp.float32(cin * 9))
        w = jax.random.normal(kw, (cout, cin, 3, 3), jnp.float32) * scale
        b = jax.random.normal(kb, (cout,), jnp.float32) * 0.01
        params.append((w, b))
    return params


# --------------------------------------------------------------------------
# Pure-JAX reference (mirrors the PyTorch module) for correctness checking.
# --------------------------------------------------------------------------
def zero_dce_reference(x_nchw, params, channels=CHANNELS, iterations=ITERATIONS):
    def conv(x, w, b):
        y = jax.lax.conv_general_dilated(
            x, w, window_strides=(1, 1), padding=((1, 1), (1, 1)),
            dimension_numbers=("NCHW", "OIHW", "NCHW"),
            precision=jax.lax.Precision.HIGHEST)
        return y + b.reshape(1, -1, 1, 1)

    (w1, b1), (w2, b2), (w3, b3), (w4, b4), (w5, b5), (w6, b6), (w7, b7) = params
    relu = jax.nn.relu
    x1 = relu(conv(x_nchw, w1, b1))
    x2 = relu(conv(x1, w2, b2))
    x3 = relu(conv(x2, w3, b3))
    x4 = relu(conv(x3, w4, b4))
    x5 = relu(conv(jnp.concatenate([x3, x4], axis=1), w5, b5))
    x6 = relu(conv(jnp.concatenate([x2, x5], axis=1), w6, b6))
    x_r = jnp.tanh(conv(x6, w7, b7))
    r = tuple(x_r[:, i * channels:(i + 1) * channels] for i in range(iterations))
    xe = x_nchw
    for i in range(iterations):
        xe = xe + r[i] * (xe * xe - xe)
        xe = jnp.clip(xe, 0.0, 1.0)
    return xe, r


if __name__ == "__main__":
    key = jax.random.PRNGKey(0)
    key, kx = jax.random.split(key)

    N, C, H, W = 2, CHANNELS, 16, 16
    x = jax.random.uniform(kx, (N, C, H, W), jnp.float32)
    params = init_params(key)

    roll_np_like = _detect_roll_np_like()
    fwd = jax.jit(functools.partial(zero_dce_forward, roll_np_like=roll_np_like))

    x_enhanced, r = fwd(x, params)
    x_enhanced = jax.block_until_ready(x_enhanced)
    r = jax.block_until_ready(r)

    assert x_enhanced.shape == (N, C, H, W)
    assert len(r) == ITERATIONS and all(ri.shape == (N, C, H, W) for ri in r)

    # Correctness check against the pure-JAX reference of the PyTorch module.
    xe_ref, r_ref = zero_dce_reference(x, params)
    np.testing.assert_allclose(np.asarray(x_enhanced), np.asarray(xe_ref),
                               rtol=2e-3, atol=2e-3)
    np.testing.assert_allclose(np.asarray(jnp.stack(r)),
                               np.asarray(jnp.stack(r_ref)),
                               rtol=2e-3, atol=2e-3)

    print("KERNEL_OK")
</pallas_src>

<mosaic_0001>
module attributes {stable_mosaic.version = 11 : i64} {
  func.func @kernel(%arg0: memref<8x256xf32, #tpu.memory_space<vmem>>, %arg1: memref<8x256xf32, #tpu.memory_space<vmem>>) attributes {dimension_semantics = [], scalar_prefetch = 0 : i64, scratch_operands = 0 : i64, tpu.core_type = #tpu.core_type<tc>} {
    %c0 = arith.constant 0 : index
    %c0_0 = arith.constant 0 : index
    %0 = vector.load %arg0[%c0, %c0_0] : memref<8x256xf32, #tpu.memory_space<vmem>>, vector<8x256xf32>
    %c1_i32 = arith.constant 1 : i32
    %1 = tpu.dynamic_rotate %0 by %c1_i32 dim 1 : vector<8x256xf32>, i32 -> vector<8x256xf32>
    %c0_1 = arith.constant 0 : index
    %c0_2 = arith.constant 0 : index
    %2 = vector.load %arg1[%c0_1, %c0_2] : memref<8x256xf32, #tpu.memory_space<vmem>>, vector<8x256xf32>
    tpu.vector_store %arg1[%c0_1, %c0_2], %1 {strides = array<i32>} : memref<8x256xf32, #tpu.memory_space<vmem>>, vector<8x256xf32>,
    return
  }
}

</mosaic_0001>

<bundles_post_ra>
// kernel: tpu_custom_call.1
= control target key start
LH: loop header
LB: loop body
LE: loop exit
PB: predicated region body
PF: predicated region fallthrough
CT: control target
= control target key end

     0   :  { %6 = vsyncpa [#allocation3], 0  ;;  %s137_s0 = inlined_call_operand.hbm [shape: f32[8,256], index: 0, kind: input, shape index: {}]   ;;  %s138_s1 = inlined_call_operand.hbm [shape: f32[8,256], index: 1, kind: output, shape index: {}]  }
   0x1   :  { %7 = vsyncpa [#allocation4], 0  ;;  %s100_s6 = smov [#allocation2]   ;;  %s52_s10 = scalar_lea.hbm %s137_s0, 256 }
   0x2   :  { %s14_s7 = sshll.u32 %s100_s6, 4  ;;  %p53_p0 = scmp.ne.s32.totalorder %s137_s0, %s52_s10  ;;  %s15_s7 = int_to_ptr.vmem [resolvable:$true] %s14_s7 }
   0x3   :  { %p56_p1 = scmp.lt.u32.totalorder %s52_s10, %s137_s0 }
   0x5   :  { %p58_p2 = pnand %p56_p1, %p53_p0 }
   0x7   :  { %61 = shalt.err (!%p58_p2)
}
   0x8   :  { %s62_s15 = scalar_lea.vmem %s15_s7, 256  ;;  %p67_p4 = scmp.lt.s32.totalorder %s15_s7, %s15_s7 }
   0x9   :  { %p63_p3 = scmp.ne.s32.totalorder %s15_s7, %s62_s15  ;;  %p68_p5 = scmp.lt.s32.totalorder %s62_s15, %s62_s15 }
   0xb   :  { %p69_p6 = por %p68_p5, %p67_p4 }
   0xd   :  { %p70_p7 = pnand %p69_p6, %p63_p3 }
   0xf   :  { %73 = shalt.err (!%p70_p7)
}
  0x10   :  { %17 = dma.hbm_to_vmem [thread:$0]  %s137_s0, 256, %s15_s7, [#allocation3]  }
  0x11   :  { %96 = dma.done.wait [#allocation3], 256  }
  0x12   :  { %97 = vsyncadd [#allocation3], 4294967040  ;;  %v21_v0 = vld [vmem:[#allocation2] sm:$0xff]  ;;  %s101_s18 = smov 1   ;;  %v22_v1 = vld [vmem:[#allocation2 + $0x8] sm:$0xff]  ;;  %v27_v2 = vlaneseq  ;;  %s102_s19 = smov [#allocation5]  }
  0x13   :  { %23 = vrot.lane.b32.xlu0 %v21_v0, %s101_s18  ;;  %s40_s20 = sshll.u32 %s102_s19, 4  ;;  %s41_s20 = int_to_ptr.vmem [resolvable:$true] %s40_s20 }
  0x14   :  { %v28_v3 = vand.u32 127, %v27_v2  ;;  %s74_s0 = scalar_lea.vmem %s41_s20, 256  ;;  %p79_p9 = scmp.lt.s32.totalorder %s41_s20, %s41_s20 }
  0x15   :  { %p75_p8 = scmp.ne.s32.totalorder %s41_s20, %s74_s0  ;;  %p80_p10 = scmp.lt.s32.totalorder %s74_s0, %s74_s0 }
  0x16   :  { %vm29_vm0 = vcmp.lt.s32.totalorder %v28_v3, 1 }
  0x17   :  { %25 = vrot.lane.b32.xlu0 %v22_v1, %s101_s18  ;;  %p81_p11 = por %p80_p10, %p79_p9 }
  0x19   :  { %p82_p12 = pnand %p81_p11, %p75_p8 }
  0x85   :  { %v24_v4 = vpop.permute.xlu0 %23 }
  0x89   :  { %v26_v5 = vpop.permute.xlu0 %25 }
  0x8a   :  { %v30_v6 = vsel %vm29_vm0, %v24_v4, %v26_v5  ;;  %v31_v7 = vsel %vm29_vm0, %v26_v5, %v24_v4 }
  0x8b   :  { %32 = vst [vmem:[#allocation5] sm:$0xff] %v31_v7  ;;  %33 = vst [vmem:[#allocation5 + $0x8] sm:$0xff] %v30_v6 }
  0x8c   :  { %85 = shalt.err (!%p82_p12)
}
  0x8d   :  { %s86_s23 = scalar_lea.hbm %s138_s1, 256 }
  0x8e   :  { %p87_p13 = scmp.ne.s32.totalorder %s138_s1, %s86_s23  ;;  %p90_p0 = scmp.lt.u32.totalorder %s86_s23, %s138_s1 }
  0x90   :  { %p92_p1 = pnand %p90_p0, %p87_p13 }
  0x92   :  { %95 = shalt.err (!%p92_p1)
}
  0x93   :  { %43 = dma.vmem_to_hbm [thread:$0]  %s41_s20, 256, %s138_s1, [#allocation4]  }
  0x94   :  { %98 = dma.done.wait [#allocation4], 256  }
  0x95   :  { %99 = vsyncadd [#allocation4], 4294967040 }
  0x96   :  { %47 = vsyncpa [#allocation3], 1 }
  0x97   :  { %48 = vsyncpa [#allocation4], 1 }

</bundles_post_ra>
